<compile_context>
chip_gen: v7x
topology: tpu7x:2x2x1
jax: 0.10.0
libtpu: 0.0.40
codegen_flags: <defaults>
</compile_context>

<pallas_src>
import jax
import jax.numpy as jnp
from jax import lax
from jax.experimental import pallas as pl
from jax.experimental.pallas import tpu as pltpu

HIDDEN = 2048
BN_EPS = 1e-5


def _vmem_limit_bytes():
    """Generation-aware VMEM limit: ~16 MiB headroom, capped at 112 MiB."""
    try:
        cap = pltpu.get_tpu_info().vmem_capacity_bytes
    except Exception:
        return 48 << 20  # safe on every generation (v7x has 64 MiB physical)
    return int(min(cap - (16 << 20), 112 << 20))


def supcon_head_kernel(x_ref, w1_ref, gb_ref, w2_ref, b2_ref, o_ref):
    """One grid step == one tile_h-wide slice of the 2048 hidden features."""

    @pl.when(pl.program_id(0) == 0)
    def _init():
        # Seed the resident f32 output accumulator with the Linear-2 bias.
        o_ref[...] = jnp.broadcast_to(b2_ref[...], o_ref.shape)

    # ---- Linear 1 for this hidden tile (b1 omitted: cancelled by BN mean) ----
    h = jnp.dot(x_ref[...], w1_ref[...],
                preferred_element_type=jnp.float32)            # (N, tile_h) f32

    # ---- Training-mode BatchNorm1d: two-pass centered stats in f32 ----------
    mean = jnp.mean(h, axis=0, keepdims=True)                  # (1, tile_h)
    hc = h - mean
    var = jnp.mean(hc * hc, axis=0, keepdims=True)             # biased variance
    scale = gb_ref[0:1, :] * lax.rsqrt(var + BN_EPS)           # gamma * rsqrt

    # ---- BN affine + ReLU in one fused elementwise pass ---------------------
    h_act = jnp.maximum(hc * scale + gb_ref[1:2, :], 0.0)

    # ---- Linear 2 partial product, accumulated in the resident f32 output ---
    o_ref[...] += jnp.dot(h_act.astype(w2_ref.dtype), w2_ref[...],
                          preferred_element_type=jnp.float32)


def prepare_params(w1, b1, gamma, beta, w2, b2, *, compute_dtype=jnp.bfloat16):
    """One-time weight preprocessing.  Call at module init, NOT per step.

    w1: (2048, d_in)  b1: (2048,)  gamma/beta: (2048,)
    w2: (d_out, 2048) b2: (d_out,)            [PyTorch layouts]
    """
    del b1  # exactly cancelled by the training-mode BatchNorm mean subtraction
    hidden, d_in = w1.shape
    d_out = w2.shape[0]
    assert hidden == HIDDEN and w2.shape == (d_out, HIDDEN)
    d_out_pad = max(128, pl.cdiv(d_out, 128) * 128)   # lane-dense output

    w1_t = jnp.transpose(w1).astype(compute_dtype)                      # (d_in, 2048)
    w2_t = jnp.zeros((HIDDEN, d_out_pad), compute_dtype)
    w2_t = w2_t.at[:, :d_out].set(jnp.transpose(w2).astype(compute_dtype))
    gb = jnp.stack([gamma, beta]).astype(jnp.float32)                   # (2, 2048)
    b2_row = jnp.zeros((1, d_out_pad), jnp.float32).at[:, :d_out].set(
        b2.astype(jnp.float32))
    return dict(w1_t=w1_t, gb=gb, w2_t=w2_t, b2_row=b2_row, d_out=d_out)


def supcon_head_fwd(x, params, *, tile_h=512, w1_buffer_count=2,
                    compute_dtype=jnp.bfloat16):
    """Fused SupConHead forward from pre-prepared params.  Returns (N, d_out).

    tile_h: sweep 512 / 1024 per chip.  w1_buffer_count: use 3 on v5e.
    """
    n, d_in = x.shape
    w1_t, gb, w2_t, b2_row = (params["w1_t"], params["gb"],
                              params["w2_t"], params["b2_row"])
    d_out = params["d_out"]
    d_out_pad = w2_t.shape[1]
    assert w1_t.shape[0] == d_in
    assert HIDDEN % tile_h == 0 and tile_h % 128 == 0

    x_c = x.astype(compute_dtype)
    grid = (HIDDEN // tile_h,)

    out_padded = pl.pallas_call(
        supcon_head_kernel,
        out_shape=jax.ShapeDtypeStruct((n, d_out_pad), jnp.float32),
        grid=grid,
        in_specs=[
            # x: constant block index -> resident; single-buffer (VMEM saver).
            pl.BlockSpec((n, d_in), lambda h: (0, 0),
                         pipeline_mode=pl.Buffered(1)),
            # W1 column tile: streamed; Buffered(3) hides DMA on v5e.
            pl.BlockSpec((d_in, tile_h), lambda h: (0, h),
                         pipeline_mode=pl.Buffered(w1_buffer_count)),
            # gamma/beta packed: one small DMA per step instead of two.
            pl.BlockSpec((2, tile_h), lambda h: (0, h)),
            # W2 row tile: streamed.
            pl.BlockSpec((tile_h, d_out_pad), lambda h: (h, 0)),
            # b2: constant block -> single-buffer.
            pl.BlockSpec((1, d_out_pad), lambda h: (0, 0),
                         pipeline_mode=pl.Buffered(1)),
        ],
        # Output is the accumulator (resident across the reduction axis);
        # single-buffer it too.
        out_specs=pl.BlockSpec((n, d_out_pad), lambda h: (0, 0),
                               pipeline_mode=pl.Buffered(1)),
        compiler_params=pltpu.CompilerParams(
            dimension_semantics=("arbitrary",),   # hidden axis is a reduction
            vmem_limit_bytes=_vmem_limit_bytes(),
        ),
    )(x_c, w1_t, gb, w2_t, b2_row)

    # Slice off the lane padding; the cast fuses with the slice in XLA.
    return out_padded[:, :d_out].astype(x.dtype)


def supcon_head(x, w1, b1, gamma, beta, w2, b2, **kwargs):
    """Convenience one-shot API (prefer prepare_params once + supcon_head_fwd)."""
    return supcon_head_fwd(x, prepare_params(w1, b1, gamma, beta, w2, b2),
                           **kwargs)


def reference(x, w1, b1, gamma, beta, w2, b2):
    """Full-precision f32 reference matching the PyTorch module (train mode)."""
    h = x @ w1.T + b1
    mean = jnp.mean(h, axis=0, keepdims=True)
    var = jnp.mean((h - mean) ** 2, axis=0, keepdims=True)
    h = (h - mean) * lax.rsqrt(var + BN_EPS) * gamma + beta
    h = jnp.maximum(h, 0.0)
    return h @ w2.T + b2


if __name__ == "__main__":
    # Small, module-consistent shapes: batch=8, input_dim=32, output_dim=16.
    N, D_IN, D_OUT = 8, 32, 16

    key = jax.random.PRNGKey(0)
    kx, kw1, kb1, kg, kbt, kw2, kb2 = jax.random.split(key, 7)

    x = jax.random.normal(kx, (N, D_IN), dtype=jnp.float32)
    w1 = 0.05 * jax.random.normal(kw1, (HIDDEN, D_IN), dtype=jnp.float32)
    b1 = 0.01 * jax.random.normal(kb1, (HIDDEN,), dtype=jnp.float32)
    gamma = 1.0 + 0.1 * jax.random.normal(kg, (HIDDEN,), dtype=jnp.float32)
    beta = 0.1 * jax.random.normal(kbt, (HIDDEN,), dtype=jnp.float32)
    w2 = 0.02 * jax.random.normal(kw2, (D_OUT, HIDDEN), dtype=jnp.float32)
    b2 = 0.01 * jax.random.normal(kb2, (D_OUT,), dtype=jnp.float32)

    params = prepare_params(w1, b1, gamma, beta, w2, b2)   # once, at "init"
    out = jax.block_until_ready(supcon_head_fwd(x, params))
    ref = reference(x, w1, b1, gamma, beta, w2, b2)

    assert out.shape == (N, D_OUT)
    # bf16 matmul operands (f32 accumulation) vs full-precision f32 reference.
    assert jnp.allclose(out, ref, atol=3e-2, rtol=3e-2), "mismatch vs reference"

    print("KERNEL_OK")
</pallas_src>

<mosaic_0001>
module attributes {stable_mosaic.version = 11 : i64} {
  func.func @supcon_head_kernel(%arg0: i32, %arg1: memref<8x32xbf16, #tpu.memory_space<vmem>>, %arg2: memref<32x512xbf16, #tpu.memory_space<vmem>>, %arg3: memref<2x512xf32, #tpu.memory_space<vmem>>, %arg4: memref<512x128xbf16, #tpu.memory_space<vmem>>, %arg5: memref<1x128xf32, #tpu.memory_space<vmem>>, %arg6: memref<8x128xf32, #tpu.memory_space<vmem>>) attributes {dimension_semantics = [#tpu.dimension_semantics<arbitrary>], iteration_bounds = array<i64: 4>, scalar_prefetch = 0 : i64, scratch_operands = 0 : i64, tpu.core_type = #tpu.core_type<tc>, window_params = [{pipeline_mode = #tpu.pipeline_mode<synchronous>, transform_indices = @transform_0, window_bounds = array<i64: 8, 32>}, {pipeline_mode = #tpu.pipeline_mode<double_buffered>, transform_indices = @transform_1, window_bounds = array<i64: 32, 512>}, {transform_indices = @transform_2, window_bounds = array<i64: 2, 512>}, {transform_indices = @transform_3, window_bounds = array<i64: 512, 128>}, {pipeline_mode = #tpu.pipeline_mode<synchronous>, transform_indices = @transform_4, window_bounds = array<i64: 1, 128>}, {pipeline_mode = #tpu.pipeline_mode<synchronous>, transform_indices = @transform_5, window_bounds = array<i64: 8, 128>}]} {
    %c0_i32 = arith.constant 0 : i32
    %0 = arith.cmpi eq, %arg0, %c0_i32 : i32
    %1 = arith.extui %0 : i1 to i32
    %c0_i32_0 = arith.constant 0 : i32
    %2 = arith.cmpi ne, %1, %c0_i32_0 : i32
    scf.if %2 {
      %c0_20 = arith.constant 0 : index
      %c0_21 = arith.constant 0 : index
      %35 = vector.load %arg5[%c0_20, %c0_21] : memref<1x128xf32, #tpu.memory_space<vmem>>, vector<1x128xf32>
      %36 = vector.shape_cast %35 : vector<1x128xf32> to vector<1x128xf32>
      %37 = vector.broadcast %36 : vector<1x128xf32> to vector<8x128xf32>
      %c0_22 = arith.constant 0 : index
      %c0_23 = arith.constant 0 : index
      %38 = vector.load %arg6[%c0_22, %c0_23] : memref<8x128xf32, #tpu.memory_space<vmem>>, vector<8x128xf32>
      tpu.vector_store %arg6[%c0_22, %c0_23], %37 {strides = array<i32>} : memref<8x128xf32, #tpu.memory_space<vmem>>, vector<8x128xf32>,
    } else {
    }
    %c0 = arith.constant 0 : index
    %c0_1 = arith.constant 0 : index
    %3 = vector.load %arg1[%c0, %c0_1] : memref<8x32xbf16, #tpu.memory_space<vmem>>, vector<8x32xbf16>
    %c0_2 = arith.constant 0 : index
    %c0_3 = arith.constant 0 : index
    %4 = vector.load %arg2[%c0_2, %c0_3] : memref<32x512xbf16, #tpu.memory_space<vmem>>, vector<32x512xbf16>
    %cst = arith.constant dense<0.000000e+00> : vector<8x512xf32>
    %5 = tpu.matmul %3, %4, %cst {dimension_numbers = #tpu.dot_dimension_numbers<[1], [0], [0], [1], [0, 0, 1, 1], [], []>} : vector<8x32xbf16>, vector<32x512xbf16>, vector<8x512xf32> -> vector<8x512xf32>
    %cst_4 = arith.constant dense<0.000000e+00> : vector<512xf32>
    %6 = vector.multi_reduction <add>, %5, %cst_4 [0] : vector<8x512xf32> to vector<512xf32>
    %7 = vector.shape_cast %6 : vector<512xf32> to vector<1x512xf32>
    %cst_5 = arith.constant 8.000000e+00 : f32
    %8 = vector.broadcast %cst_5 : f32 to vector<1x512xf32>
    %9 = arith.divf %7, %8 : vector<1x512xf32>
    %10 = vector.broadcast %9 : vector<1x512xf32> to vector<8x512xf32>
    %11 = arith.subf %5, %10 : vector<8x512xf32>
    %12 = arith.mulf %11, %11 : vector<8x512xf32>
    %cst_6 = arith.constant dense<0.000000e+00> : vector<512xf32>
    %13 = vector.multi_reduction <add>, %12, %cst_6 [0] : vector<8x512xf32> to vector<512xf32>
    %14 = vector.shape_cast %13 : vector<512xf32> to vector<1x512xf32>
    %cst_7 = arith.constant 8.000000e+00 : f32
    %15 = vector.broadcast %cst_7 : f32 to vector<1x512xf32>
    %16 = arith.divf %14, %15 : vector<1x512xf32>
    %c0_8 = arith.constant 0 : index
    %c0_9 = arith.constant 0 : index
    %17 = vector.load %arg3[%c0_8, %c0_9] : memref<2x512xf32, #tpu.memory_space<vmem>>, vector<1x512xf32>
    %cst_10 = arith.constant 9.99999974E-6 : f32
    %18 = vector.broadcast %cst_10 : f32 to vector<1x512xf32>
    %19 = arith.addf %16, %18 : vector<1x512xf32>
    %20 = math.rsqrt %19 : vector<1x512xf32>
    %21 = arith.mulf %17, %20 : vector<1x512xf32>
    %22 = vector.broadcast %21 : vector<1x512xf32> to vector<8x512xf32>
    %23 = arith.mulf %11, %22 : vector<8x512xf32>
    %c1 = arith.constant 1 : index
    %c0_11 = arith.constant 0 : index
    %24 = vector.load %arg3[%c1, %c0_11] : memref<2x512xf32, #tpu.memory_space<vmem>>, vector<1x512xf32>
    %25 = vector.broadcast %24 : vector<1x512xf32> to vector<8x512xf32>
    %26 = arith.addf %23, %25 : vector<8x512xf32>
    %cst_12 = arith.constant 0.000000e+00 : f32
    %27 = vector.broadcast %cst_12 : f32 to vector<8x512xf32>
    %28 = arith.maximumf %26, %27 : vector<8x512xf32>
    %c0_13 = arith.constant 0 : index
    %c0_14 = arith.constant 0 : index
    %29 = vector.load %arg6[%c0_13, %c0_14] : memref<8x128xf32, #tpu.memory_space<vmem>>, vector<8x128xf32>
    %30 = arith.truncf %28 : vector<8x512xf32> to vector<8x512xbf16>
    %c0_15 = arith.constant 0 : index
    %c0_16 = arith.constant 0 : index
    %31 = vector.load %arg4[%c0_15, %c0_16] : memref<512x128xbf16, #tpu.memory_space<vmem>>, vector<512x128xbf16>
    %cst_17 = arith.constant dense<0.000000e+00> : vector<8x128xf32>
    %32 = tpu.matmul %30, %31, %cst_17 {dimension_numbers = #tpu.dot_dimension_numbers<[1], [0], [0], [1], [0, 0, 1, 1], [], []>} : vector<8x512xbf16>, vector<512x128xbf16>, vector<8x128xf32> -> vector<8x128xf32>
    %33 = arith.addf %29, %32 : vector<8x128xf32>
    %c0_18 = arith.constant 0 : index
    %c0_19 = arith.constant 0 : index
    %34 = vector.load %arg6[%c0_18, %c0_19] : memref<8x128xf32, #tpu.memory_space<vmem>>, vector<8x128xf32>
    tpu.vector_store %arg6[%c0_18, %c0_19], %33 {strides = array<i32>} : memref<8x128xf32, #tpu.memory_space<vmem>>, vector<8x128xf32>,
    return
  }
  func.func @transform_0(%arg0: i32) -> (i32, i32) {
    %c0_i32 = arith.constant 0 : i32
    %c0_i32_0 = arith.constant 0 : i32
    %c0_i32_1 = arith.constant 0 : i32
    return %c0_i32, %c0_i32_0 : i32, i32
  }
  func.func @transform_1(%arg0: i32) -> (i32, i32) {
    %c0_i32 = arith.constant 0 : i32
    %c0_i32_0 = arith.constant 0 : i32
    return %c0_i32, %arg0 : i32, i32
  }
  func.func @transform_2(%arg0: i32) -> (i32, i32) {
    %c0_i32 = arith.constant 0 : i32
    %c0_i32_0 = arith.constant 0 : i32
    return %c0_i32, %arg0 : i32, i32
  }
  func.func @transform_3(%arg0: i32) -> (i32, i32) {
    %c0_i32 = arith.constant 0 : i32
    %c0_i32_0 = arith.constant 0 : i32
    return %arg0, %c0_i32 : i32, i32
  }
  func.func @transform_4(%arg0: i32) -> (i32, i32) {
    %c0_i32 = arith.constant 0 : i32
    %c0_i32_0 = arith.constant 0 : i32
    %c0_i32_1 = arith.constant 0 : i32
    return %c0_i32, %c0_i32_0 : i32, i32
  }
  func.func @transform_5(%arg0: i32) -> (i32, i32) {
    %c0_i32 = arith.constant 0 : i32
    %c0_i32_0 = arith.constant 0 : i32
    %c0_i32_1 = arith.constant 0 : i32
    return %c0_i32, %c0_i32_0 : i32, i32
  }
}

</mosaic_0001>

<bundles_post_ra>
// kernel: tpu_custom_call.1
= control target key start
LH: loop header
LB: loop body
LE: loop exit
PB: predicated region body
PF: predicated region fallthrough
CT: control target
= control target key end

     0   :  { %s1861_s0 = inlined_call_operand.hbm [shape: bf16[8,32], index: 0, kind: input, shape index: {}]   ;;  %s1862_s1 = inlined_call_operand.hbm [shape: bf16[32,2048], index: 1, kind: input, shape index: {}]   ;;  %s1863_s2 = inlined_call_operand.hbm [shape: f32[2,2048], index: 2, kind: input, shape index: {}]   ;;  %s1864_s3 = inlined_call_operand.hbm [shape: bf16[2048,128], index: 3, kind: input, shape index: {}]   ;;  %s1865_s4 = inlined_call_operand.vmem [shape: f32[1,128], index: 4, kind: input, shape index: {}]   ;;  %s1866_s5 = inlined_call_operand.hbm [shape: f32[8,128], index: 5, kind: output, shape index: {}]  }
   0x1   :  { %1874 = sst [smem:[#allocation15_spill]] %s1862_s1 }
   0x2   :  { %10 = vsyncpa [#allocation3], 0 }
   0x3   :  { %11 = vsyncpa [#allocation6], 0 }
   0x4   :  { %13 = vsyncpa [#allocation6 + $0x1], 0 }
   0x5   :  { %14 = vsyncpa [#allocation9], 0 }
   0x6   :  { %16 = vsyncpa [#allocation9 + $0x1], 0 }
   0x7   :  { %17 = vsyncpa [#allocation4], 0  ;;  %s1559_s18 = smov 0   ;;  %s1561_s19 = smov 0  }
   0x8   :  { %s1563_s20 = smov 0   ;;  %s1565_s21 = smov 0  }
   0x9 LB: > { %s1580_s22 = sadd.s32 1, %s1515_s21   ;;  %s51_s23 = sadd.s32 1, %s1511_s20  ;;  %s1515_s21 = sphi %s1565_s21, %s1891_s21   ;;  %s1511_s20 = sphi %s1563_s20, %s1890_s20   ;;  %s1507_s19 = sphi %s1561_s19, %s1889_s19   ;;  %s1503_s18 = sphi %s1559_s18, %s1888_s18  }
   0xa   : > { %s48_s24 = ssub.s32 %s1515_s21, %s1580_s22  ;;  %p58_p0 = scmp.ne.s32.totalorder %s1511_s20, %s1507_s19 }
   0xb   : > { %p49_p1 = scmp.eq.s32.totalorder %s48_s24, 0  ;;  %p59_p2 = scmp.eq.s32.totalorder %s1515_s21, 0 }
   0xc   : > { %p1228_p3 = scmp.lt.s32.totalorder %s1515_s21, 4  ;;  %s196_s26 = sand.u32 1, %s1515_s21  }
   0xd   : > { %s1590_s25 = scalar_select %p49_p1, %s1511_s20, %s51_s23  }
   0xe   : > { %p60_p4 = por %p59_p2, %p58_p0  ;;  %s1594_s27 = sand.u32 1, %s1511_s20  }
   0xf   : > { %s1089_s28 = sshll.u32 %s1594_s27, 6  ;;  %s1152_s29 = sshll.u32 %s1515_s21, 8 }
  0x10   : > { %s1875_s1 = sld [smem:[#allocation15_spill]]  ;;  %s200_s8 = scalar_lea.vmem [#allocation5], %s1089_s28 }
  0x11   : > { %s207_s9 = sshll.u32 %s200_s8, 4  ;;  %p1603_p5 = pnand %p1228_p3, %p60_p4  ;;  %s1607_s9 = int_to_ptr.vmem [resolvable:$true] %s207_s9 }
  0x12   : > { %s1609_s11 = scalar_lea.sflag [#allocation6], %s196_s26 }
  0x13   : > { %s1876_s10 = scalar_select %p1603_p5, 1, 0 }
  0x14   : > { %p1615_p7 = pneg %p1603_p5 }
  0x16   : > { %s1601_s7 = scalar_lea.hbm %s1875_s1, %s1152_s29  ;;  %s1330_s16 = scalar_lea.hbm %s1875_s1, 4096 }
  0x17   : > { %s1325_s12 = scalar_lea.hbm %s1601_s7, 1024  ;;  %p1331_p10 = scmp.lt.u32.totalorder %s1601_s7, %s1875_s1 }
  0x18   : > { %p1326_p6 = scmp.ne.s32.totalorder %s1601_s7, %s1325_s12  ;;  %p1332_p11 = scmp.lt.u32.totalorder %s1330_s16, %s1325_s12 }
  0x19   : > { %s1877_s13 = scalar_select %p1615_p7, 1, 0 }
  0x1a   : > { %p1328_p8 = pnand %p1615_p7, %p1326_p6  ;;  %p1333_p12 = por %p1332_p11, %p1331_p10 }
  0x1b   : > { %p1334_p13 = scmp.lt.u32.totalorder %s1325_s12, %s1601_s7 }
  0x1c   : > { %p1329_p9 = pneg %p1328_p8 }
  0x1d   : > { %p1335_p0 = por %p1334_p13, %p1333_p12 }
  0x1f   : > { %p1336_p1 = pnand %p1335_p0, %p1329_p9 }
  0x21   : > { %1339 = shalt.err (!%p1336_p1)
}
  0x22   : > { %s1340_s24 = scalar_lea.vmem %s1607_s9, 1024  ;;  %s1517_s26 = smov [#allocation5]  }
  0x23   : > { %p1341_p2 = scmp.ne.s32.totalorder %s1607_s9, %s1340_s24  ;;  %s1345_s28 = sshll.u32 %s1517_s26, 4  ;;  %s1346_s28 = int_to_ptr.vmem [resolvable:$false] %s1345_s28 }
  0x24   : > { %s1347_s29 = scalar_lea.vmem %s1346_s28, 2048  ;;  %p1348_p6 = scmp.lt.s32.totalorder %s1607_s9, %s1346_s28 }
  0x25   : > { %p1343_p3 = pnand %p1341_p2, %p1615_p7  ;;  %p1349_p8 = scmp.lt.s32.totalorder %s1347_s29, %s1340_s24 }
  0x27   : > { %p1344_p4 = pneg %p1343_p3  ;;  %p1350_p10 = por %p1349_p8, %p1348_p6 }
  0x29   : > { %p1351_p11 = pnand %p1350_p10, %p1344_p4 }
  0x2b   : > { %1354 = shalt.err (!%p1351_p11)
}
  0x2c   : > { %s1518_s30 = smov 1024   ;;  %s1519_s6 = smov 256  }
  0x2d   : > { %s1520_s8 = smov 16   ;;  %s1640_s12 = sadd.s32 4294967295, %s1515_s21  }
  0x2e   : > { %1220 = dma.hbm_to_vmem [thread:$0]  (!%p1603_p5), %s1601_s7, 1024, %s1607_s9, %s1609_s11, %s1518_s30, %s1519_s6, %s1520_s8  }
  0x2f   : > { %p64_p9 = scmp.ne.s32.totalorder %s1507_s19, %s1503_s18  ;;  %p1867_p12 = scmp.eq.s32.totalorder %s1640_s12, 0 }
  0x30   : > { %p1086_p13 = scmp.ge.s32.totalorder %s1515_s21, 1  ;;  %p169_p0 = scmp.lt.s32.totalorder %s1515_s21, 5 }
  0x31   : > { %p1649_p1 = por %p1867_p12, %p64_p9  ;;  %s1521_s7 = smov [#allocation2]  }
  0x32   : > { %p1654_p3 = pnand %p1086_p13, %p169_p0  ;;  %s182_s9 = sshll.u32 %s1521_s7, 4  ;;  %s183_s9 = int_to_ptr.vmem [resolvable:$true] %s182_s9 }
  0x33   : > { %s1878_s14 = scalar_select %p1649_p1, 1, 0 }
  0x34   : > { %s1879_s15 = scalar_select %p1654_p3, 1, 0 }
  0x35   : > { %s1092_s16 = sshll.u32 %s1594_s27, 3  ;;  %p1213_p4 = pneg %p1654_p3 }
  0x36   : > { %s1153_s18 = sshll.u32 %s1515_s21, 7  ;;  %s221_s28 = scalar_lea.vmem [#allocation7], %s1092_s16 }
  0x37   : > { %p1664_p6 = pnand %p1213_p4, %p1867_p12  ;;  %s1671_s26 = scalar_lea.hbm %s1863_s2, %s1153_s18 }
  0x38   : > { %s229_s29 = sshll.u32 %s221_s28, 4  ;;  %s1355_s8 = scalar_lea.hbm %s1861_s0, 64  ;;  %s1673_s29 = int_to_ptr.vmem [resolvable:$true] %s229_s29 }
  0x39   : > { %p1356_p8 = scmp.ne.s32.totalorder %s1861_s0, %s1355_s8  ;;  %p1357_p10 = pneg %p1664_p6 }
  0x3a   : > { %p1362_p13 = scmp.lt.u32.totalorder %s1355_s8, %s1861_s0 }
  0x3b   : > { %p1358_p11 = pnand %p1357_p10, %p1356_p8 }
  0x3d   : > { %p1359_p9 = pneg %p1358_p11 }
  0x3f   : > { %p1364_p0 = pnand %p1362_p13, %p1359_p9 }
  0x41   : > { %1367 = shalt.err (!%p1364_p0)
}
  0x42   : > { %s1368_s16 = scalar_lea.vmem %s183_s9, 64  ;;  %p1376_p1 = scmp.lt.s32.totalorder %s183_s9, %s183_s9 }
  0x43   : > { %p1369_p4 = scmp.ne.s32.totalorder %s183_s9, %s1368_s16  ;;  %p1377_p3 = scmp.lt.s32.totalorder %s1368_s16, %s1368_s16 }
  0x45   : > { %p1371_p2 = pnand %p1369_p4, %p1357_p10  ;;  %p1378_p5 = por %p1377_p3, %p1376_p1 }
  0x47   : > { %p1372_p12 = pneg %p1371_p2 }
  0x49   : > { %p1379_p7 = pnand %p1378_p5, %p1372_p12 }
  0x4b   : > { %1382 = shalt.err (!%p1379_p7)
}
  0x4c   : > { %1216 = dma.hbm_to_vmem [thread:$0]  (!%p1664_p6), %s1861_s0, 64, %s183_s9, [#allocation3]  }
  0x4d   : > { %s1383_s28 = scalar_lea.hbm %s1671_s26, 128  ;;  %p1881_p10 = scmp.ne.s32.totalorder %s1877_s13, 0 }
  0x4e   : > { %p1384_p8 = scmp.ne.s32.totalorder %s1671_s26, %s1383_s28  ;;  %s1388_s8 = scalar_lea.hbm %s1863_s2, 512 }
  0x4f   : > { %p1389_p5 = scmp.lt.u32.totalorder %s1671_s26, %s1863_s2  ;;  %p1390_p7 = scmp.lt.u32.totalorder %s1388_s8, %s1383_s28 }
  0x50   : > { %p1386_p2 = pnand %p1384_p8, %p1881_p10  ;;  %p1392_p1 = scmp.lt.u32.totalorder %s1383_s28, %s1671_s26 }
  0x51   : > { %p1391_p12 = por %p1390_p7, %p1389_p5 }
  0x52   : > { %p1387_p11 = pneg %p1386_p2 }
  0x53   : > { %p1393_p3 = por %p1392_p1, %p1391_p12 }
  0x55   : > { %p1394_p9 = pnand %p1393_p3, %p1387_p11 }
  0x57   : > { %1397 = shalt.err (!%p1394_p9)
}
  0x58   : > { %s1398_s9 = scalar_lea.vmem %s1673_s29, 128  ;;  %s1522_s23 = smov [#allocation7]  }
  0x59   : > { %p1399_p6 = scmp.ne.s32.totalorder %s1673_s29, %s1398_s9  ;;  %s1403_s24 = sshll.u32 %s1522_s23, 4  ;;  %s1404_s24 = int_to_ptr.vmem [resolvable:$false] %s1403_s24 }
  0x5a   : > { %s1405_s16 = scalar_lea.vmem %s1404_s24, 256  ;;  %p1406_p4 = scmp.lt.s32.totalorder %s1673_s29, %s1404_s24 }
  0x5b   : > { %p1401_p13 = pnand %p1399_p6, %p1881_p10  ;;  %p1407_p8 = scmp.lt.s32.totalorder %s1405_s16, %s1398_s9 }
  0x5d   : > { %p1402_p0 = pneg %p1401_p13  ;;  %p1408_p2 = por %p1407_p8, %p1406_p4 }
  0x5f   : > { %p1409_p5 = pnand %p1408_p2, %p1402_p0 }
  0x61   : > { %1412 = shalt.err (!%p1409_p5)
}
  0x62   : > { %p1882_p11 = scmp.ne.s32.totalorder %s1876_s10, 0  ;;  %s1095_s1 = sshll.u32 %s1594_s27, 8 }
  0x63   : > { %s1154_s18 = sshll.u32 %s1515_s21, 12  ;;  %s240_s8 = scalar_lea.vmem [#allocation8], %s1095_s1 }
  0x64   : > { %1223 = dma.hbm_to_vmem [thread:$0]  (!%p1882_p11), %s1671_s26, 128, %s1673_s29, %s1609_s11  }
  0x65   : > { %s1718_s6 = scalar_lea.hbm %s1864_s3, %s1154_s18  ;;  %s247_s7 = sshll.u32 %s240_s8, 4  ;;  %s1720_s7 = int_to_ptr.vmem [resolvable:$true] %s247_s7 }
  0x66   : > { %s237_s17 = scalar_lea.sflag [#allocation9], %s1594_s27  ;;  %s1413_s9 = scalar_lea.hbm %s1718_s6, 4096 }
  0x67   : > { %p1414_p7 = scmp.ne.s32.totalorder %s1718_s6, %s1413_s9  ;;  %s1418_s26 = scalar_lea.hbm %s1864_s3, 16384 }
  0x68   : > { %p1419_p3 = scmp.lt.u32.totalorder %s1718_s6, %s1864_s3  ;;  %p1420_p9 = scmp.lt.u32.totalorder %s1418_s26, %s1413_s9 }
  0x69   : > { %p1416_p12 = pnand %p1414_p7, %p1881_p10  ;;  %p1422_p13 = scmp.lt.u32.totalorder %s1413_s9, %s1718_s6 }
  0x6a   : > { %p1421_p6 = por %p1420_p9, %p1419_p3 }
  0x6b   : > { %p1417_p1 = pneg %p1416_p12 }
  0x6c   : > { %p1423_p0 = por %p1422_p13, %p1421_p6 }
  0x6e   : > { %p1424_p4 = pnand %p1423_p0, %p1417_p1 }
  0x70   : > { %1427 = shalt.err (!%p1424_p4)
}
  0x71   : > { %s1428_s24 = scalar_lea.vmem %s1720_s7, 4096  ;;  %s1523_s16 = smov [#allocation8]  }
  0x72   : > { %p1429_p8 = scmp.ne.s32.totalorder %s1720_s7, %s1428_s24  ;;  %s1433_s1 = sshll.u32 %s1523_s16, 4  ;;  %s1434_s1 = int_to_ptr.vmem [resolvable:$false] %s1433_s1 }
  0x73   : > { %s1435_s18 = scalar_lea.vmem %s1434_s1, 8192  ;;  %p1436_p7 = scmp.lt.s32.totalorder %s1720_s7, %s1434_s1 }
  0x74   : > { %p1431_p2 = pnand %p1429_p8, %p1881_p10  ;;  %p1437_p12 = scmp.lt.s32.totalorder %s1435_s18, %s1428_s24 }
  0x76   : > { %p1432_p5 = pneg %p1431_p2  ;;  %p1438_p3 = por %p1437_p12, %p1436_p7 }
  0x78   : > { %p1439_p9 = pnand %p1438_p3, %p1432_p5 }
  0x7a   : > { %1442 = shalt.err (!%p1439_p9)
}
  0x7b   : > { %s1524_s28 = smov 64   ;;  %s1525_s30 = smov 4  }
  0x7c   : > { %1226 = dma.hbm_to_vmem [thread:$0]  (!%p1882_p11), %s1718_s6, 4096, %s1720_s7, %s237_s17, %s1524_s28, %s1524_s28, %s1525_s30  }
  0x7d   : > { %p1883_p10 = scmp.ne.s32.totalorder %s1879_s15, 0 }
  0x7e   : > { %p1884_p1 = scmp.eq.s32.totalorder (!%p1883_p10), %s1640_s12, 0 }
  0x7f   : > { %259 = sbr.rel (%p1883_p10) target bundleno = 678 (0x2a6), region = 40 }
  0x86   : > { %1486 = dma.done.wait (%p1884_p1), [#allocation3], 64   ;;  %p1885_p6 = pmov %p1884_p1 }
  0x87   : > { %s265_s13 = sand.u32 1, %s1640_s12   ;;  %s267_s8 = sand.u32 1, %s1507_s19  }
  0x88   : > { %1488 = vsyncadd (%p1885_p6), [#allocation3], 4294967232  ;;  %s1100_s9 = sshll.u32 %s267_s8, 6  ;;  %s266_s21 = scalar_lea.sflag [#allocation6], %s265_s13 }
  0x89   : > { %s269_s11 = scalar_lea.vmem [#allocation5], %s1100_s9  ;;  %p1886_p13 = scmp.ne.s32.totalorder %s1878_s14, 0 }
  0x8b   : > { %1490 = dma.done.wait (%p1886_p13), %s266_s21, 1152  }
  0x8c   : > { %1492 = vsyncadd (%p1886_p13), %s266_s21, 4294966144  ;;  %s1101_s27 = sshll.u32 %s267_s8, 3  ;;  %s1102_s10 = sshll.u32 %s267_s8, 8 }
  0x8d   : > { %s1758_s15 = scalar_lea.vmem [#allocation7], %s1101_s27  ;;  %s284_s6 = scalar_lea.sflag [#allocation9], %s267_s8 }
  0x8e   : > { %s1760_s7 = scalar_lea.vmem [#allocation8], %s1102_s10 }
  0x8f   : > { %1494 = dma.done.wait (%p1886_p13), %s284_s6, 4096  }
  0x90   : > { %1496 = vsyncadd (%p1886_p13), %s284_s6, 4294963200  ;;  %p1887_p11 = scmp.ne.s32.totalorder %s1640_s12, 0 }
  0x91   : > { %v1104_v0 = vld [vmem:[%s1865_s4] ss:$0 sm:$0xff] (!%p1887_p11) }
  0x92   : > { %326 = sbr.rel (%p1887_p11) target bundleno = 153 (0x99), region = 60  ;;  %334 = vst [vmem:[#allocation10] sm:$0xff] (!%p1887_p11), %v1104_v0 }
  0x99 PF: > { %v1273_v1 = vld [vmem:[%s269_s11 + $0x4] ss:$16 sps:$4 sm:$0xff]   ;;  %v1275_v2 = vld [vmem:[%s269_s11 + $0xc] ss:$16 sps:$4 sm:$0xff]   ;;  %v1526_v3 = vmov 0   ;;  %vm384_vm0 = vcmask 261120  }
  0x9a   : > { %420 = vmatprep.mubr.bf16.mxu0 %v1526_v3  ;;  %461 = vmatprep.mubr.bf16.mxu1 %v1526_v3  ;;  %v1277_v4 = vld [vmem:[%s269_s11] ss:$16 sps:$4 sm:$0xff]   ;;  %v1278_v5 = vld [vmem:[%s269_s11 + $0x8] ss:$16 sps:$4 sm:$0xff]   ;;  %v1279_v6 = vld [vmem:[%s269_s11 + $0x24] ss:$16 sps:$4 sm:$0xff]  }
  0x9b   : > { %388 = vmatprep.subr.bf16.mxu0 %v1273_v1  ;;  %429 = vmatprep.subr.bf16.mxu1 %v1275_v2  ;;  %v1281_v7 = vld [vmem:[%s269_s11 + $0x2c] ss:$16 sps:$4 sm:$0xff]   ;;  %v1283_v8 = vld [vmem:[%s269_s11 + $0x20] ss:$16 sps:$4 sm:$0xff]   ;;  %v1284_v9 = vld [vmem:[%s269_s11 + $0x28] ss:$16 sps:$4 sm:$0xff]  }
  0x9c   : > { %389 = vmatpush1.bf16.msra.mxu0 %v1277_v4  ;;  %430 = vmatpush1.bf16.msra.mxu1 %v1278_v5  ;;  %v335_v10 = vld [vmem:[#allocation2] sm:$0xf]  ;;  %v1285_v11 = vld [vmem:[%s1760_s7 + $0x40] sm:$0xff]   ;;  %v1293_v19 = vld [vmem:[%s1760_s7 + $0x50] sm:$0xff]   ;;  %s1528_s14 = smov [#allocation10]   ;;  %p1230_p0 = scmp.eq.s32.totalorder %s1640_s12, 3 }
  0x9d   : > { %390 = vmatprep.subr.bf16.mxu0 %v1279_v6  ;;  %431 = vmatprep.subr.bf16.mxu1 %v1281_v7  ;;  %v1286_v12 = vld [vmem:[%s1760_s7 + $0xc0] sm:$0xff]   ;;  %v1289_v15 = vld [vmem:[%s1760_s7 + $0x48] sm:$0xff]   ;;  %v1294_v20 = vld [vmem:[%s1760_s7 + $0xd0] sm:$0xff]   ;;  %s980_s29 = sshll.u32 %s1528_s14, 4  ;;  %s981_s29 = int_to_ptr.vmem [resolvable:$true] %s980_s29 }
  0x9e   : > { %v1287_v13 = vld [vmem:[%s1760_s7] sm:$0xff]   ;;  %v1290_v16 = vld [vmem:[%s1760_s7 + $0xc8] sm:$0xff]   ;;  %v1295_v21 = vld [vmem:[%s1760_s7 + $0x10] sm:$0xff]   ;;  %s1443_s23 = scalar_lea.vmem %s981_s29, 128  ;;  %p1450_p5 = scmp.lt.s32.totalorder %s981_s29, %s981_s29 }
  0x9f   : > { %v1288_v14 = vld [vmem:[%s1760_s7 + $0x80] sm:$0xff]   ;;  %v1291_v17 = vld [vmem:[%s1760_s7 + $0x8] sm:$0xff]   ;;  %v1296_v22 = vld [vmem:[%s1760_s7 + $0x90] sm:$0xff]   ;;  %p1444_p4 = scmp.ne.s32.totalorder %s981_s29, %s1443_s23  ;;  %p1451_p7 = scmp.lt.s32.totalorder %s1443_s23, %s1443_s23 }
  0xa0   : > { %391 = vmatpush1.bf16.msra.mxu0 %v1283_v8  ;;  %432 = vmatpush1.bf16.msra.mxu1 %v1284_v9  ;;  %v1292_v18 = vld [vmem:[%s1760_s7 + $0x88] sm:$0xff]   ;;  %v1297_v23 = vld [vmem:[%s1760_s7 + $0x58] sm:$0xff]   ;;  %v1301_v27 = vld [vmem:[%s1760_s7 + $0x60] sm:$0xff]  }
  0xa1   : > { %1155 = vmatprep.subr.bf16.mxu0 %v1285_v11  ;;  %1177 = vmatprep.subr.bf16.mxu1 %v1286_v12  ;;  %v1298_v24 = vld [vmem:[%s1760_s7 + $0xd8] sm:$0xff]   ;;  %v1302_v28 = vld [vmem:[%s1760_s7 + $0xe0] sm:$0xff]   ;;  %v1305_v31 = vld [vmem:[%s1760_s7 + $0x68] sm:$0xff]   ;;  %p1445_p8 = pnand %p1444_p4, %p1230_p0  ;;  %p1452_p12 = por %p1451_p7, %p1450_p5 }
  0xa2   : > { %v1299_v25 = vld [vmem:[%s1760_s7 + $0x18] sm:$0xff]   ;;  %v1303_v29 = vld [vmem:[%s1760_s7 + $0x20] sm:$0xff]   ;;  %v1306_v32 = vld [vmem:[%s1760_s7 + $0xe8] sm:$0xff]  }
  0xa3   : > { %1113 = vmatmul.mubr.msk.bf16.vlgmr.msra.gmra.mrb[0].mxu0 %vm384_vm0, %v335_v10  ;;  %1114 = vmatmul.mubr.msk.bf16.vlgmr.msra.gmra.mrb[0].mxu1 %vm384_vm0, %v335_v10  ;;  %v1300_v26 = vld [vmem:[%s1760_s7 + $0x98] sm:$0xff]   ;;  %v1304_v30 = vld [vmem:[%s1760_s7 + $0xa0] sm:$0xff]   ;;  %v1307_v33 = vld [vmem:[%s1760_s7 + $0x28] sm:$0xff]   ;;  %p1446_p2 = pneg %p1445_p8 }
  0xa4   : > { %1156 = vmatpush3.bf16.msra.mxu0 %v1287_v13  ;;  %1178 = vmatpush3.bf16.msra.mxu1 %v1288_v14  ;;  %v1308_v34 = vld [vmem:[%s1760_s7 + $0xa8] sm:$0xff]   ;;  %v1309_v35 = vld [vmem:[%s1760_s7 + $0x70] sm:$0xff]   ;;  %v1313_v39 = vld [vmem:[%s1760_s7 + $0x78] sm:$0xff]  }
  0xa5   : > { %1157 = vmatprep.subr.bf16.mxu0 %v1289_v15  ;;  %1179 = vmatprep.subr.bf16.mxu1 %v1290_v16  ;;  %v1310_v36 = vld [vmem:[%s1760_s7 + $0xf0] sm:$0xff]   ;;  %v1314_v40 = vld [vmem:[%s1760_s7 + $0xf8] sm:$0xff]   ;;  %p1453_p3 = pnand %p1452_p12, %p1446_p2 }
  0xa6   : > { %v1311_v37 = vld [vmem:[%s1760_s7 + $0x30] sm:$0xff]   ;;  %v1315_v41 = vld [vmem:[%s1760_s7 + $0x38] sm:$0xff]  }
  0xa7   : > { %v1312_v38 = vld [vmem:[%s1760_s7 + $0xb0] sm:$0xff]   ;;  %v1316_v42 = vld [vmem:[%s1760_s7 + $0xb8] sm:$0xff]  }
  0xa8   : > { %1158 = vmatpush3.bf16.msra.mxu0 %v1291_v17  ;;  %1180 = vmatpush3.bf16.msra.mxu1 %v1292_v18 }
  0xa9   : > { %1159 = vmatprep.subr.bf16.mxu0 %v1293_v19  ;;  %1181 = vmatprep.subr.bf16.mxu1 %v1294_v20 }
  0xac   : > { %1160 = vmatpush3.bf16.msra.mxu0 %v1295_v21  ;;  %1182 = vmatpush3.bf16.msra.mxu1 %v1296_v22 }
  0xad   : > { %1161 = vmatprep.subr.bf16.mxu0 %v1297_v23  ;;  %1183 = vmatprep.subr.bf16.mxu1 %v1298_v24 }
  0xb0   : > { %1162 = vmatpush3.bf16.msra.mxu0 %v1299_v25  ;;  %1184 = vmatpush3.bf16.msra.mxu1 %v1300_v26 }
  0xb1   : > { %1163 = vmatprep.subr.bf16.mxu0 %v1301_v27  ;;  %1185 = vmatprep.subr.bf16.mxu1 %v1302_v28 }
  0xb4   : > { %1164 = vmatpush3.bf16.msra.mxu0 %v1303_v29  ;;  %1186 = vmatpush3.bf16.msra.mxu1 %v1304_v30 }
  0xb5   : > { %1165 = vmatprep.subr.bf16.mxu0 %v1305_v31  ;;  %1187 = vmatprep.subr.bf16.mxu1 %v1306_v32 }
  0xb8   : > { %1166 = vmatpush3.bf16.msra.mxu0 %v1307_v33  ;;  %1188 = vmatpush3.bf16.msra.mxu1 %v1308_v34 }
  0xb9   : > { %1167 = vmatprep.subr.bf16.mxu0 %v1309_v35  ;;  %1189 = vmatprep.subr.bf16.mxu1 %v1310_v36 }
  0xbc   : > { %1168 = vmatpush3.bf16.msra.mxu0 %v1311_v37  ;;  %1190 = vmatpush3.bf16.msra.mxu1 %v1312_v38 }
  0xbd   : > { %1169 = vmatprep.subr.bf16.mxu0 %v1313_v39  ;;  %1191 = vmatprep.subr.bf16.mxu1 %v1314_v40 }
  0xc0   : > { %1170 = vmatpush3.bf16.msra.mxu0 %v1315_v41  ;;  %1192 = vmatpush3.bf16.msra.mxu1 %v1316_v42 }
 0x176   : > { %v422_v43 = vpop.f32.mrb[0].mxu0  ;;  %v463_v44 = vpop.f32.mrb[0].mxu1 }
 0x177   : > { %v470_v45 = vrot.slane %v422_v43, 4  ;;  %v482_v46 = vrot.slane %v463_v44, 4  ;;  %v424_v47 = vpop.f32.mrb[1].mxu0  ;;  %v465_v48 = vpop.f32.mrb[1].mxu1 }
 0x178   : > { %v476_v49 = vrot.slane %v424_v47, 4  ;;  %v488_v50 = vrot.slane %v465_v48, 4  ;;  %v426_v51 = vpop.f32.mrb[2].mxu0  ;;  %v467_v52 = vpop.f32.mrb[2].mxu1 }
 0x179   : > { %v471_v53 = vadd.f32 %v470_v45, %v422_v43  ;;  %v483_v54 = vadd.f32 %v482_v46, %v463_v44  ;;  %v427_v55 = vpop.f32.mrb[3].mxu0  ;;  %v468_v56 = vpop.f32.mrb[3].mxu1 }
 0x17a   : > { %v477_v57 = vadd.f32 %v476_v49, %v424_v47  ;;  %v489_v58 = vadd.f32 %v488_v50, %v465_v48  ;;  %v1527_v55 = vmov 1966171168  }
 0x17b   : > { %v472_v59 = vrot.slane %v471_v53, 2  ;;  %v484_v60 = vrot.slane %v483_v54, 2  ;;  %v551_v56 = vunpack.c.l.s4 %v1527_v55 }
 0x17c   : > { %v478_v61 = vrot.slane %v477_v57, 2  ;;  %v490_v62 = vrot.slane %v489_v58, 2 }
 0x17d   : > { %v473_v63 = vadd.f32 %v472_v59, %v471_v53  ;;  %v485_v0 = vadd.f32 %v484_v60, %v483_v54 }
 0x17e   : > { %v479_v1 = vadd.f32 %v478_v61, %v477_v57  ;;  %v491_v2 = vadd.f32 %v490_v62, %v489_v58  ;;  %v553_v57 = vlaneseq  ;;  %v552_v58 = vunpack.c.0.s8 %v551_v56 }
 0x17f   : > { %v474_v3 = vrot.slane %v473_v63, 1  ;;  %v486_v4 = vrot.slane %v485_v0, 1 }
 0x180   : > { %v480_v5 = vrot.slane %v479_v1, 1  ;;  %v492_v6 = vrot.slane %v491_v2, 1  ;;  %v554_v59 = vshrl.u32 %v553_v57, 7 }
 0x181   : > { %v475_v7 = vadd.f32 %v474_v3, %v473_v63  ;;  %v487_v8 = vadd.f32 %v486_v4, %v485_v0 }
 0x182   : > { %v481_v9 = vadd.f32 %v480_v5, %v479_v1  ;;  %v493_v10 = vadd.f32 %v492_v6, %v491_v2  ;;  %v555_v62 = vsub.s32 %v552_v58, %v554_v59  ;;  %v535_v6 = vld [vmem:[%s1758_s15] ss:$2 sm:$0xf] }
 0x183   : > { %v495_v11 = vmul.f32 0.125, %v475_v7  ;;  %v497_v12 = vmul.f32 0.125, %v487_v8  ;;  %v589_v7 = vsub.s32 3, %v554_v59 }
 0x184   : > { %v496_v13 = vmul.f32 0.125, %v481_v9  ;;  %v498_v14 = vmul.f32 0.125, %v493_v10  ;;  %v581_v9 = vsub.s32 1, %v554_v59  ;;  %v1115_v10 = vld [vmem:[%s1758_s15 + $0x1] ss:$2 sm:$0xf] }
 0x185   : > { %v1803_v15 = vsub.f32 %v422_v43, %v495_v11  ;;  %v1805_v16 = vsub.f32 %v463_v44, %v497_v12  ;;  %v577_v11 = vsub.s32 0, %v554_v59  ;;  %v585_v12 = vsub.s32 2, %v554_v59 }
 0x186   : > { %v1807_v17 = vsub.f32 %v424_v47, %v496_v13  ;;  %v1809_v18 = vsub.f32 %v465_v48, %v498_v14  ;;  %v609_v14 = vrot.slane %v1115_v10, %v581_v9 }
 0x187   : > { %v503_v19 = vmul.f32 %v1803_v15, %v1803_v15  ;;  %v505_v20 = vmul.f32 %v1805_v16, %v1805_v16 }
 0x188   : > { %v504_v21 = vmul.f32 %v1807_v17, %v1807_v17  ;;  %v506_v22 = vmul.f32 %v1809_v18, %v1809_v18 }
 0x189   : > { %v507_v23 = vrot.slane %v503_v19, 4  ;;  %v519_v24 = vrot.slane %v505_v20, 4 }
 0x18a   : > { %v513_v25 = vrot.slane %v504_v21, 4  ;;  %v525_v26 = vrot.slane %v506_v22, 4 }
 0x18b   : > { %v508_v27 = vadd.f32 %v507_v23, %v503_v19  ;;  %v520_v28 = vadd.f32 %v519_v24, %v505_v20  ;;  %v617_v19 = vrot.slane %v1115_v10, %v589_v7  ;;  %v605_v20 = vrot.slane %v1115_v10, %v577_v11 }
 0x18c   : > { %v514_v29 = vadd.f32 %v513_v25, %v504_v21  ;;  %v526_v30 = vadd.f32 %v525_v26, %v506_v22  ;;  %v613_v21 = vrot.slane %v1115_v10, %v585_v12 }
 0x18d   : > { %v509_v31 = vrot.slane %v508_v27, 2  ;;  %v521_v32 = vrot.slane %v520_v28, 2 }
 0x18e   : > { %v515_v33 = vrot.slane %v514_v29, 2  ;;  %v527_v34 = vrot.slane %v526_v30, 2 }
 0x18f   : > { %v510_v35 = vadd.f32 %v509_v31, %v508_v27  ;;  %v522_v36 = vadd.f32 %v521_v32, %v520_v28 }
 0x190   : > { %v516_v37 = vadd.f32 %v515_v33, %v514_v29  ;;  %v528_v38 = vadd.f32 %v527_v34, %v526_v30 }
 0x191   : > { %v511_v39 = vrot.slane %v510_v35, 1  ;;  %v523_v40 = vrot.slane %v522_v36, 1 }
 0x192   : > { %v517_v41 = vrot.slane %v516_v37, 1  ;;  %v529_v42 = vrot.slane %v528_v38, 1 }
 0x193   : > { %v512_v43 = vadd.f32 %v511_v39, %v510_v35  ;;  %v524_v44 = vadd.f32 %v523_v40, %v522_v36 }
 0x194   : > { %v518_v45 = vadd.f32 %v517_v41, %v516_v37  ;;  %v530_v46 = vadd.f32 %v529_v42, %v528_v38 }
 0x195   : > { %v531_v47 = vmul.f32 0.125, %v512_v43  ;;  %v533_v48 = vmul.f32 0.125, %v524_v44 }
 0x196   : > { %v532_v49 = vmul.f32 0.125, %v518_v45  ;;  %v534_v50 = vmul.f32 0.125, %v530_v46 }
 0x197   : > { %v536_v51 = vadd.f32 1e-05, %v531_v47  ;;  %v538_v52 = vadd.f32 1e-05, %v533_v48  ;;  %v630_v48 = vld [vmem:[#allocation10] sm:$0xff] }
 0x198   : > { %v537_v53 = vadd.f32 1e-05, %v532_v49  ;;  %v539_v54 = vadd.f32 1e-05, %v534_v50 }
 0x199   : > { %1317 = vrsqrt.f32 %v536_v51 }
 0x19a   : > { %1319 = vrsqrt.f32 %v538_v52 }
 0x19b   : > { %1321 = vrsqrt.f32 %v537_v53 }
 0x19c   : > { %1323 = vrsqrt.f32 %v539_v54 }
 0x1a3   : > { %v1318_v60 = vpop.eup %1317 }
 0x1a4   : > { %v1320_v61 = vpop.eup %1319 }
 0x1a5   : > { %v1322_v63 = vpop.eup %1321 }
 0x1a6   : > { %v1324_v0 = vpop.eup %1323  ;;  %v548_v1 = vcombine.low %v1318_v60, %v1322_v63 }
 0x1a7   : > { %v549_v2 = vcombine.low %v1320_v61, %v1324_v0 }
 0x1a8   : > { %v556_v3 = vrot.slane %v548_v1, %v555_v62 }
 0x1a9   : > { %v563_v4 = vrot.slane %v549_v2, %v555_v62 }
 0x1ab   : > { %v564_v5 = vcombine.low %v556_v3, %v563_v4 }
 0x1ad   : > { %v571_v8 = vrot.slane %v564_v5, %v555_v62 }
 0x1af   : > { %v573_v13 = vmul.f32 %v571_v8, %v535_v6 }
 0x1b1   : > { %v590_v22 = vrot.slane %v573_v13, %v589_v7  ;;  %v582_v23 = vrot.slane %v573_v13, %v581_v9  ;;  %v578_v24 = vrot.slane %v573_v13, %v577_v11  ;;  %v586_v25 = vrot.slane %v573_v13, %v585_v12 }
 0x1b3   : > { %v598_v26 = vmul.f32 %v590_v22, %v1809_v18  ;;  %v596_v27 = vmul.f32 %v582_v23, %v1807_v17  ;;  %v595_v28 = vmul.f32 %v578_v24, %v1803_v15  ;;  %v597_v29 = vmul.f32 %v586_v25, %v1805_v16 }
 0x1b5   : > { %v623_v30 = vadd.f32 %v609_v14, %v596_v27  ;;  %v625_v31 = vadd.f32 %v617_v19, %v598_v26  ;;  %v622_v32 = vadd.f32 %v605_v20, %v595_v28  ;;  %v624_v33 = vadd.f32 %v613_v21, %v597_v29 }
 0x1b7   : > { %v627_v34 = vmax.f32 %v623_v30, 0.0  ;;  %v629_v35 = vmax.f32 %v625_v31, 0.0  ;;  %v626_v36 = vmax.f32 %v622_v32, 0.0  ;;  %v628_v37 = vmax.f32 %v624_v33, 0.0 }
 0x1b9   : > { %v632_v38 = vpack.c.bf16 %v627_v34, %v627_v34  ;;  %v634_v39 = vpack.c.bf16 %v629_v35, %v629_v35  ;;  %v631_v40 = vpack.c.bf16 %v626_v36, %v626_v36  ;;  %v633_v41 = vpack.c.bf16 %v628_v37, %v628_v37 }
 0x1bb   : > { %923 = vmatprep.mubr.bf16.mxu0 %v632_v38  ;;  %963 = vmatprep.mubr.bf16.mxu1 %v634_v39 }
 0x1bc   : > { %924 = vmatmul.mubr.bf16.vlgmr.msra.gmra.mrb[4].mxu0 %v631_v40  ;;  %964 = vmatmul.mubr.bf16.vlgmr.msra.gmra.mrb[4].mxu1 %v633_v41 }
 0x28f   : > { %v1171_v15 = vpop.f32.mrb[4].mxu0  ;;  %v1193_v17 = vpop.f32.mrb[4].mxu1 }
 0x290   : > { %v1172_v16 = vpop.f32.mrb[5].mxu0  ;;  %v1194_v18 = vpop.f32.mrb[5].mxu1 }
 0x291   : > { %v1173_v42 = vadd.f32 %v1172_v16, %v1171_v15  ;;  %v1195_v43 = vadd.f32 %v1194_v18, %v1193_v17  ;;  %v1174_v44 = vpop.f32.mrb[6].mxu0  ;;  %v1196_v45 = vpop.f32.mrb[6].mxu1 }
 0x292   : > { %v1175_v46 = vpop.f32.mrb[7].mxu0  ;;  %v1197_v47 = vpop.f32.mrb[7].mxu1 }
 0x293   : > { %v966_v49 = vadd.f32 %v1195_v43, %v1173_v42 }
 0x295   : > { %v971_v50 = vadd.f32 %v966_v49, %v630_v48 }
 0x297   : > { %972 = vst [vmem:[#allocation10] sm:$0xff] %v971_v50 }
 0x298   : > { %1456 = shalt.err (!%p1453_p3)
}
 0x299   : > { %s1457_s1 = scalar_lea.hbm %s1866_s5, 128 }
 0x29a   : > { %p1458_p9 = scmp.ne.s32.totalorder %s1866_s5, %s1457_s1  ;;  %p1463_p6 = scmp.lt.u32.totalorder %s1457_s1, %s1866_s5 }
 0x29c   : > { %p1459_p10 = pnand %p1458_p9, %p1230_p0 }
 0x29e   : > { %p1460_p1 = pneg %p1459_p10 }
 0x2a0   : > { %p1465_p13 = pnand %p1463_p6, %p1460_p1 }
 0x2a2   : > { %1468 = shalt.err (!%p1465_p13)
}
 0x2a3   : > { %1210 = dma.vmem_to_hbm [thread:$0]  (%p1230_p0), %s981_s29, 128, %s1866_s5, [#allocation4]  }
 0x2a4   : > { %1498 = dma.done.wait (%p1230_p0), [#allocation4], 128  }
 0x2a5   : > { %1500 = vsyncadd (%p1230_p0), [#allocation4], 4294967168 }
 0x2a6 PF: > { %p20_p11 = scmp.ge.s32.totalorder %s1580_s22, 6   ;;  %s1888_s18 = smov %s1507_s19 }
 0x2a7   : > { %s1889_s19 = smov %s1511_s20  ;;  %s1890_s20 = smov %s1590_s25 }
 0x2a8   : > { %s1891_s21 = smov %s1580_s22  ;;  %22 = sbr.rel (!%p20_p11) target bundleno = 9 (0x9), region = 111 }
 0x2af   :  { %993 = vsyncpa [#allocation3], 1 }
 0x2b0   :  { %995 = vsyncpa [#allocation3 + $0x1], 1 }
 0x2b1   :  { %996 = vsyncpa [#allocation6], 1 }
 0x2b2   :  { %998 = vsyncpa [#allocation6 + $0x1], 1 }
 0x2b3   :  { %999 = vsyncpa [#allocation9], 1 }
 0x2b4   :  { %1001 = vsyncpa [#allocation9 + $0x1], 1 }
 0x2b5   :  { %1002 = vsyncpa [#allocation4], 1 }
 0x2b6   :  { %1004 = vsyncpa [#allocation4 + $0x1], 1 }

</bundles_post_ra>
